<compile_context>
chip_gen: v6e
topology: v6e:2x2x1
jax: 0.10.0
libtpu: 0.0.40
codegen_flags: <defaults>
</compile_context>

<pallas_src>
import functools

import numpy as np

import jax
import jax.numpy as jnp
from jax.experimental import pallas as pl
from jax.experimental.pallas import tpu as pltpu


def _conv3x3_relu_kernel(x_ref, w_ref, b_ref, mask_ref, o_ref, *, W):
    """3x3 conv (pad=1) + bias + ReLU on a lane-dense chunk of whole images.

    x_ref:    (Cin, L)       L = imgs_per_block * H * W, images back-to-back
    w_ref:    (Cout, 9*Cin)  tap-major packed weights (col = t*Cin + cin)
    b_ref:    (Cout, 1)      bias
    mask_ref: (9, L)         1.0 where tap (ky,kx) is in-bounds, else 0.0
    o_ref:    (Cout, L)      lane-dense output
    """
    L = x_ref.shape[1]
    x = x_ref[...].astype(jnp.float32)          # (Cin, L)
    mask = mask_ref[...]                        # (9, L), lives in vregs

    # Build the 9 taps in registers.  Tap (ky,kx) with dy=ky-1, dx=kx-1 needs
    #   shifted[c, p] = x[c, p + s],  s = dy*W + dx.
    # pltpu.roll matches jnp.roll: roll(x, -s)[p] == x[(p + s) mod L].  Chunk
    # boundaries coincide with image boundaries, so every wrapped / cross-image
    # / out-of-bounds position is exactly where the mask is zero.
    taps = []
    for ky in range(3):
        dy = ky - 1
        for kx in range(3):
            dx = kx - 1
            t = ky * 3 + kx
            s = dy * W + dx
            shifted = x if s == 0 else pltpu.roll(x, shift=(-s) % L, axis=1)
            if t == 4:
                taps.append(shifted)            # center tap: mask is all ones
            else:
                taps.append(shifted * mask[t:t + 1, :])
    patches = jnp.concatenate(taps, axis=0)     # (9*Cin, L), never hits VMEM

    # Single MXU contraction over K = 9*Cin, lane dim N = L.
    acc = jnp.dot(w_ref[...], patches, preferred_element_type=jnp.float32)
    acc = acc + b_ref[...]                      # bias (lane broadcast)
    o_ref[...] = jnp.maximum(acc, 0.0).astype(o_ref.dtype)


def pack_conv3x3_params(weight, bias):
    """One-time repack (module init / grow_filters time), hoisted off the
    forward path.  weight: (Cout, Cin, 3, 3), bias: (Cout,)."""
    Cout, Cin = weight.shape[0], weight.shape[1]
    # (Cout, Cin, ky, kx) -> (Cout, ky, kx, Cin) -> (Cout, 9*Cin),
    # column index = (ky*3+kx)*Cin + cin, matching the patches row layout.
    w_mat = jnp.transpose(weight, (0, 2, 3, 1)).reshape(
        Cout, 9 * Cin).astype(jnp.float32)
    b2d = bias.reshape(Cout, 1).astype(jnp.float32)
    return w_mat, b2d


def choose_imgs_per_block(N, HW, target_lanes=1024):
    """Largest divisor of N whose chunk width (d*HW) stays lane-dense and
    <= target_lanes; falls back to the full batch if 128-divisibility fails."""
    best = 1
    for d in range(1, N + 1):
        if N % d == 0 and d * HW <= target_lanes:
            best = d
    if (best * HW) % 128 != 0 and best * HW != N * HW:
        best = N            # single full-width block satisfies the (8,128) rule
    return best


def make_tap_mask(H, W, imgs_per_block):
    """(9, imgs_per_block*H*W) per-tap in-bounds mask, built on the host once."""
    HW = H * W
    yy = np.arange(H).reshape(H, 1)
    xx = np.arange(W).reshape(1, W)
    rows = []
    for ky in range(3):
        for kx in range(3):
            dy, dx = ky - 1, kx - 1
            valid = ((yy + dy >= 0) & (yy + dy < H) &
                     (xx + dx >= 0) & (xx + dx < W))
            rows.append(valid.reshape(HW))
    m = np.stack(rows, axis=0).astype(np.float32)        # (9, HW)
    m = np.tile(m, (1, imgs_per_block))                  # periodic per image
    return jnp.asarray(m)


def conv3x3_relu_forward(x_nchw, w_mat, b2d, mask):
    """Forward pass.  x_nchw: (N, Cin, H, W); packed params from
    pack_conv3x3_params; mask from make_tap_mask (its width fixes the chunk)."""
    N, Cin, H, W = x_nchw.shape
    Cout = w_mat.shape[0]
    HW = H * W
    L = mask.shape[1]                     # imgs_per_block * HW (static)
    assert L % HW == 0 and (N * HW) % L == 0
    n_blocks = (N * HW) // L

    # Fold batch onto the lane axis: (N, Cin, HW) -> (Cin, N*HW).
    x2 = jnp.transpose(x_nchw.reshape(N, Cin, HW), (1, 0, 2)).reshape(
        Cin, N * HW)

    out = pl.pallas_call(
        functools.partial(_conv3x3_relu_kernel, W=W),
        out_shape=jax.ShapeDtypeStruct((Cout, N * HW), x_nchw.dtype),
        grid=(n_blocks,),
        in_specs=[
            pl.BlockSpec((Cin, L), lambda i: (0, i)),
            pl.BlockSpec((Cout, 9 * Cin), lambda i: (0, 0)),
            pl.BlockSpec((Cout, 1), lambda i: (0, 0)),
            pl.BlockSpec((9, L), lambda i: (0, 0)),
        ],
        out_specs=pl.BlockSpec((Cout, L), lambda i: (0, i)),
        compiler_params=pltpu.CompilerParams(
            dimension_semantics=("parallel",)),
    )(x2, w_mat, b2d, mask)

    # (Cout, N*HW) -> (N, Cout, H, W)
    return jnp.transpose(out.reshape(Cout, N, HW), (1, 0, 2)).reshape(
        N, Cout, H, W)


def _reference_forward(x_nchw, weight, bias):
    """Pure-JAX reference (lax conv) for correctness checking."""
    y = jax.lax.conv_general_dilated(
        x_nchw, weight,
        window_strides=(1, 1),
        padding=((1, 1), (1, 1)),
        dimension_numbers=("NCHW", "OIHW", "NCHW"))
    y = y + bias.reshape(1, -1, 1, 1)
    return jnp.maximum(y, 0.0)


if __name__ == "__main__":
    # Small shapes consistent with the module: in_1=4, out_1=8, spatial=16.
    N, Cin, H, W = 2, 4, 16, 16
    Cout = 8

    key = jax.random.PRNGKey(0)
    kx_, kw_, kb_ = jax.random.split(key, 3)

    x = jax.random.normal(kx_, (N, Cin, H, W), dtype=jnp.float32)
    fan_in = Cin * 3 * 3
    weight = jax.random.uniform(
        kw_, (Cout, Cin, 3, 3), dtype=jnp.float32,
        minval=-1.0, maxval=1.0) / jnp.sqrt(fan_in)
    bias = jax.random.uniform(
        kb_, (Cout,), dtype=jnp.float32,
        minval=-1.0, maxval=1.0) / jnp.sqrt(fan_in)

    # One-time packing (module init / grow_filters time), hoisted off the
    # per-call path.
    w_mat, b2d = pack_conv3x3_params(weight, bias)
    imgs_per_block = choose_imgs_per_block(N, H * W)
    mask = make_tap_mask(H, W, imgs_per_block)

    fwd = jax.jit(conv3x3_relu_forward)
    out = jax.block_until_ready(fwd(x, w_mat, b2d, mask))

    ref = _reference_forward(x, weight, bias)
    assert out.shape == (N, Cout, H, W)
    assert jnp.allclose(out, ref, atol=1e-4, rtol=1e-4), \
        "mismatch vs lax.conv reference"

    # TODO(synk): grow_filters() is training-time parameter surgery; its kernel
    # equivalent is simply re-calling pack_conv3x3_params on the new weights.
    print("KERNEL_OK")
</pallas_src>

<mosaic_0001>
module attributes {stable_mosaic.version = 11 : i64} {
  func.func @_conv3x3_relu_kernel(%arg0: i32, %arg1: memref<4x512xf32, #tpu.memory_space<vmem>>, %arg2: memref<8x36xf32, #tpu.memory_space<vmem>>, %arg3: memref<8x1xf32, #tpu.memory_space<vmem>>, %arg4: memref<9x512xf32, #tpu.memory_space<vmem>>, %arg5: memref<8x512xf32, #tpu.memory_space<vmem>>) attributes {dimension_semantics = [#tpu.dimension_semantics<parallel>], iteration_bounds = array<i64: 1>, scalar_prefetch = 0 : i64, scratch_operands = 0 : i64, tpu.core_type = #tpu.core_type<tc>, window_params = [{transform_indices = @transform_0, window_bounds = array<i64: 4, 512>}, {pipeline_mode = #tpu.pipeline_mode<synchronous>, transform_indices = @transform_1, window_bounds = array<i64: 8, 36>}, {pipeline_mode = #tpu.pipeline_mode<synchronous>, transform_indices = @transform_2, window_bounds = array<i64: 8, 1>}, {pipeline_mode = #tpu.pipeline_mode<synchronous>, transform_indices = @transform_3, window_bounds = array<i64: 9, 512>}, {transform_indices = @transform_4, window_bounds = array<i64: 8, 512>}]} {
    %c0 = arith.constant 0 : index
    %c0_0 = arith.constant 0 : index
    %0 = vector.load %arg1[%c0, %c0_0] : memref<4x512xf32, #tpu.memory_space<vmem>>, vector<4x512xf32>
    %c0_1 = arith.constant 0 : index
    %c0_2 = arith.constant 0 : index
    %1 = vector.load %arg4[%c0_1, %c0_2] : memref<9x512xf32, #tpu.memory_space<vmem>>, vector<9x512xf32>
    %c17_i32 = arith.constant 17 : i32
    %2 = tpu.dynamic_rotate %0 by %c17_i32 dim 1 : vector<4x512xf32>, i32 -> vector<4x512xf32>
    %3 = vector.extract_strided_slice %1 {offsets = [0, 0], sizes = [1, 512], strides = [1, 1]} : vector<9x512xf32> to vector<1x512xf32>
    %4 = vector.broadcast %3 : vector<1x512xf32> to vector<4x512xf32>
    %5 = arith.mulf %2, %4 : vector<4x512xf32>
    %c16_i32 = arith.constant 16 : i32
    %6 = tpu.dynamic_rotate %0 by %c16_i32 dim 1 : vector<4x512xf32>, i32 -> vector<4x512xf32>
    %7 = vector.extract_strided_slice %1 {offsets = [1, 0], sizes = [1, 512], strides = [1, 1]} : vector<9x512xf32> to vector<1x512xf32>
    %8 = vector.broadcast %7 : vector<1x512xf32> to vector<4x512xf32>
    %9 = arith.mulf %6, %8 : vector<4x512xf32>
    %c15_i32 = arith.constant 15 : i32
    %10 = tpu.dynamic_rotate %0 by %c15_i32 dim 1 : vector<4x512xf32>, i32 -> vector<4x512xf32>
    %11 = vector.extract_strided_slice %1 {offsets = [2, 0], sizes = [1, 512], strides = [1, 1]} : vector<9x512xf32> to vector<1x512xf32>
    %12 = vector.broadcast %11 : vector<1x512xf32> to vector<4x512xf32>
    %13 = arith.mulf %10, %12 : vector<4x512xf32>
    %c1_i32 = arith.constant 1 : i32
    %14 = tpu.dynamic_rotate %0 by %c1_i32 dim 1 : vector<4x512xf32>, i32 -> vector<4x512xf32>
    %15 = vector.extract_strided_slice %1 {offsets = [3, 0], sizes = [1, 512], strides = [1, 1]} : vector<9x512xf32> to vector<1x512xf32>
    %16 = vector.broadcast %15 : vector<1x512xf32> to vector<4x512xf32>
    %17 = arith.mulf %14, %16 : vector<4x512xf32>
    %c511_i32 = arith.constant 511 : i32
    %18 = tpu.dynamic_rotate %0 by %c511_i32 dim 1 : vector<4x512xf32>, i32 -> vector<4x512xf32>
    %19 = vector.extract_strided_slice %1 {offsets = [5, 0], sizes = [1, 512], strides = [1, 1]} : vector<9x512xf32> to vector<1x512xf32>
    %20 = vector.broadcast %19 : vector<1x512xf32> to vector<4x512xf32>
    %21 = arith.mulf %18, %20 : vector<4x512xf32>
    %c497_i32 = arith.constant 497 : i32
    %22 = tpu.dynamic_rotate %0 by %c497_i32 dim 1 : vector<4x512xf32>, i32 -> vector<4x512xf32>
    %23 = vector.extract_strided_slice %1 {offsets = [6, 0], sizes = [1, 512], strides = [1, 1]} : vector<9x512xf32> to vector<1x512xf32>
    %24 = vector.broadcast %23 : vector<1x512xf32> to vector<4x512xf32>
    %25 = arith.mulf %22, %24 : vector<4x512xf32>
    %c496_i32 = arith.constant 496 : i32
    %26 = tpu.dynamic_rotate %0 by %c496_i32 dim 1 : vector<4x512xf32>, i32 -> vector<4x512xf32>
    %27 = vector.extract_strided_slice %1 {offsets = [7, 0], sizes = [1, 512], strides = [1, 1]} : vector<9x512xf32> to vector<1x512xf32>
    %28 = vector.broadcast %27 : vector<1x512xf32> to vector<4x512xf32>
    %29 = arith.mulf %26, %28 : vector<4x512xf32>
    %c495_i32 = arith.constant 495 : i32
    %30 = tpu.dynamic_rotate %0 by %c495_i32 dim 1 : vector<4x512xf32>, i32 -> vector<4x512xf32>
    %31 = vector.extract_strided_slice %1 {offsets = [8, 0], sizes = [1, 512], strides = [1, 1]} : vector<9x512xf32> to vector<1x512xf32>
    %32 = vector.broadcast %31 : vector<1x512xf32> to vector<4x512xf32>
    %33 = arith.mulf %30, %32 : vector<4x512xf32>
    %34 = tpu.concatenate %5, %9, %13, %17, %0, %21, %25, %29, %33 in 0 : vector<4x512xf32>, vector<4x512xf32>, vector<4x512xf32>, vector<4x512xf32>, vector<4x512xf32>, vector<4x512xf32>, vector<4x512xf32>, vector<4x512xf32>, vector<4x512xf32> -> vector<36x512xf32>
    %c0_3 = arith.constant 0 : index
    %c0_4 = arith.constant 0 : index
    %35 = vector.load %arg2[%c0_3, %c0_4] : memref<8x36xf32, #tpu.memory_space<vmem>>, vector<8x36xf32>
    %cst = arith.constant dense<0.000000e+00> : vector<8x512xf32>
    %36 = tpu.matmul %35, %34, %cst {dimension_numbers = #tpu.dot_dimension_numbers<[1], [0], [0], [1], [0, 0, 1, 1], [], []>} : vector<8x36xf32>, vector<36x512xf32>, vector<8x512xf32> -> vector<8x512xf32>
    %c0_5 = arith.constant 0 : index
    %c0_6 = arith.constant 0 : index
    %37 = vector.load %arg3[%c0_5, %c0_6] : memref<8x1xf32, #tpu.memory_space<vmem>>, vector<8x1xf32>
    %38 = vector.broadcast %37 : vector<8x1xf32> to vector<8x512xf32>
    %39 = arith.addf %36, %38 : vector<8x512xf32>
    %cst_7 = arith.constant 0.000000e+00 : f32
    %40 = vector.broadcast %cst_7 : f32 to vector<8x512xf32>
    %41 = arith.maximumf %39, %40 : vector<8x512xf32>
    %c0_8 = arith.constant 0 : index
    %c0_9 = arith.constant 0 : index
    %42 = vector.load %arg5[%c0_8, %c0_9] : memref<8x512xf32, #tpu.memory_space<vmem>>, vector<8x512xf32>
    tpu.vector_store %arg5[%c0_8, %c0_9], %41 {strides = array<i32>} : memref<8x512xf32, #tpu.memory_space<vmem>>, vector<8x512xf32>,
    return
  }
  func.func @transform_0(%arg0: i32) -> (i32, i32) {
    %c0_i32 = arith.constant 0 : i32
    %c0_i32_0 = arith.constant 0 : i32
    return %c0_i32, %arg0 : i32, i32
  }
  func.func @transform_1(%arg0: i32) -> (i32, i32) {
    %c0_i32 = arith.constant 0 : i32
    %c0_i32_0 = arith.constant 0 : i32
    %c0_i32_1 = arith.constant 0 : i32
    return %c0_i32, %c0_i32_0 : i32, i32
  }
  func.func @transform_2(%arg0: i32) -> (i32, i32) {
    %c0_i32 = arith.constant 0 : i32
    %c0_i32_0 = arith.constant 0 : i32
    %c0_i32_1 = arith.constant 0 : i32
    return %c0_i32, %c0_i32_0 : i32, i32
  }
  func.func @transform_3(%arg0: i32) -> (i32, i32) {
    %c0_i32 = arith.constant 0 : i32
    %c0_i32_0 = arith.constant 0 : i32
    %c0_i32_1 = arith.constant 0 : i32
    return %c0_i32, %c0_i32_0 : i32, i32
  }
  func.func @transform_4(%arg0: i32) -> (i32, i32) {
    %c0_i32 = arith.constant 0 : i32
    %c0_i32_0 = arith.constant 0 : i32
    return %c0_i32, %arg0 : i32, i32
  }
}

</mosaic_0001>

<bundles_post_ra>
// kernel: conv3x3_relu_forward.1
= control target key start
LH: loop header
LB: loop body
LE: loop exit
PB: predicated region body
PF: predicated region fallthrough
CT: control target
= control target key end

     0   :  { %s564_s19 = smov 112   ;;  %s565_s20 = smov 111   ;;  %v571_v4 = vmov 0.0   ;;  %v572_v5 = vmov 0   ;;  %v41_v11 = vlaneseq  ;;  %vm347_vm1 = vcmask 1043456   ;;  %s824_s0 = inlined_call_operand.vmem [shape: f32[4,512], index: 0, kind: input, shape index: {}]   ;;  %s825_s2 = inlined_call_operand.vmem [shape: f32[8,1], index: 2, kind: input, shape index: {}]   ;;  %s826_s3 = inlined_call_operand.vmem [shape: f32[9,512], index: 3, kind: input, shape index: {}]   ;;  %s827_s1 = inlined_call_operand.vmem [shape: f32[8,36], index: 1, kind: input, shape index: {}]   ;;  %s828_s4 = inlined_call_operand.vmem [shape: f32[8,512], index: 4, kind: output, shape index: {}]  }
   0x1   :  { %v602_v0 = vld [vmem:[%s824_s0 + $0x8] sm:$0xff]  ;;  %v607_v1 = vld [vmem:[%s824_s0] sm:$0xff]  ;;  %s566_s0 = smov 127   ;;  %s567_s21 = smov 113   ;;  %451 = vmatprep.mubr.f32.mxu0 %v571_v4  ;;  %522 = vmatprep.mubr.f32.mxu1 %v571_v4  ;;  %v543_v16 = vld [vmem:[%s826_s3 + $0x30] ss:$0 sm:$0xff] }
   0x2   :  { %237 = vrot.lane.b32.xlu1 %v602_v0, %s564_s19  ;;  %233 = vrot.lane.b32.xlu0 %v607_v1, %s564_s19  ;;  %v613_v2 = vcombine.high %v602_v0, %v602_v0  ;;  %v617_v3 = vcombine.high %v607_v1, %v607_v1  ;;  %s568_s22 = smov 1   ;;  %s569_s23 = smov 16   ;;  %v365_v6 = vld [vmem:[%s825_s2] sm:$0xff]  ;;  %v652_v12 = vand.u32 127, %v41_v11  ;;  %v655_v15 = vshrl.u32 %v41_v11, 7  ;;  %v673_v31 = vld [vmem:[%s826_s3 + $0x10] sm:$0xff] }
   0x3   :  { %s570_s24 = smov 15   ;;  %561 = vset.pattern.permute.xlu0 %v572_v5  ;;  %s573_s25 = smov 17   ;;  %v542_v17 = vld [vmem:[%s826_s3 + $0x28] ss:$0 sm:$0xff]  ;;  %v544_v18 = vld [vmem:[%s826_s3 + $0x38] ss:$0 sm:$0xff] }
   0x4   :  { %vm274_vm0 = vcmp.lt.s32.totalorder %v652_v12, 111  ;;  %v541_v19 = vld [vmem:[%s826_s3 + $0x20] ss:$0 sm:$0xff]  ;;  %v248_v29 = vsub.s32 7, %v655_v15  ;;  %v678_v32 = vld [vmem:[%s826_s3 + $0x18] sm:$0xff]  ;;  %vm241_vm2 = vcmp.lt.s32.totalorder %v652_v12, 112 }
   0x5   :  { %v686_v35 = vld [vmem:[%s826_s3 + $0x8] sm:$0xff]  ;;  %v693_v36 = vld [vmem:[%s826_s3] sm:$0xff]  ;;  %v182_v37 = vsub.s32 5, %v655_v15  ;;  %vm175_vm3 = vcmp.lt.s32.totalorder %v652_v12, 127  ;;  %v215_v49 = vsub.s32 6, %v655_v15  ;;  %vm208_vm4 = vcmp.lt.s32.totalorder %v652_v12, 113 }
   0x6   :  { %239 = vrot.lane.b32.xlu1 %v613_v2, %s564_s19  ;;  %235 = vrot.lane.b32.xlu0 %v617_v3, %s564_s19  ;;  %v257_v38 = vrot.slane %v673_v31, %v248_v29  ;;  %v261_v39 = vrot.slane %v678_v32, %v248_v29  ;;  %v253_v42 = vrot.slane %v686_v35, %v248_v29  ;;  %vm142_vm5 = vcmp.lt.s32.totalorder %v652_v12, 1 }
   0x7   :  { %v195_v43 = vrot.slane %v678_v32, %v182_v37  ;;  %v249_v46 = vrot.slane %v693_v36, %v248_v29  ;;  %v183_v50 = vrot.slane %v693_v36, %v182_v37  ;;  %v187_v51 = vrot.slane %v686_v35, %v182_v37 }
   0x8   :  { %v191_v52 = vrot.slane %v673_v31, %v182_v37  ;;  %v216_v63 = vrot.slane %v693_v36, %v215_v49  ;;  %v228_v4 = vrot.slane %v678_v32, %v215_v49  ;;  %vm76_vm6 = vcmp.lt.s32.totalorder %v652_v12, 16 }
   0x9   :  { %vm109_vm7 = vcmp.lt.s32.totalorder %v652_v12, 15  ;;  %vm43_vm8 = vcmp.lt.s32.totalorder %v652_v12, 17  ;;  %vm371_vm9 = vcmask 293888  }
   0xa   :  { %268 = vrot.lane.b32.xlu1 %v617_v3, %s565_s20  ;;  %266 = vrot.lane.b32.xlu0 %v607_v1, %s565_s20 }
   0xe   :  { %272 = vrot.lane.b32.xlu1 %v613_v2, %s565_s20  ;;  %270 = vrot.lane.b32.xlu0 %v602_v0, %s565_s20 }
  0x12   :  { %169 = vrot.lane.b32.xlu1 %v617_v3, %s566_s0  ;;  %167 = vrot.lane.b32.xlu0 %v607_v1, %s566_s0 }
  0x16   :  { %173 = vrot.lane.b32.xlu1 %v613_v2, %s566_s0  ;;  %171 = vrot.lane.b32.xlu0 %v602_v0, %s566_s0 }
  0x1a   :  { %202 = vrot.lane.b32.xlu1 %v617_v3, %s567_s21  ;;  %200 = vrot.lane.b32.xlu0 %v607_v1, %s567_s21 }
  0x1e   :  { %206 = vrot.lane.b32.xlu1 %v613_v2, %s567_s21  ;;  %204 = vrot.lane.b32.xlu0 %v602_v0, %s567_s21 }
  0x22   :  { %136 = vrot.lane.b32.xlu1 %v617_v3, %s568_s22  ;;  %134 = vrot.lane.b32.xlu0 %v607_v1, %s568_s22 }
  0x26   :  { %140 = vrot.lane.b32.xlu1 %v613_v2, %s568_s22  ;;  %138 = vrot.lane.b32.xlu0 %v602_v0, %s568_s22 }
  0x2a   :  { %70 = vrot.lane.b32.xlu1 %v617_v3, %s569_s23  ;;  %68 = vrot.lane.b32.xlu0 %v607_v1, %s569_s23 }
  0x2e   :  { %74 = vrot.lane.b32.xlu1 %v613_v2, %s569_s23  ;;  %72 = vrot.lane.b32.xlu0 %v602_v0, %s569_s23 }
  0x32   :  { %103 = vrot.lane.b32.xlu1 %v617_v3, %s570_s24  ;;  %101 = vrot.lane.b32.xlu0 %v607_v1, %s570_s24 }
  0x36   :  { %107 = vrot.lane.b32.xlu1 %v613_v2, %s570_s24  ;;  %105 = vrot.lane.b32.xlu0 %v602_v0, %s570_s24 }
  0x3a   :  { %35 = vrot.lane.b32.xlu1 %v617_v3, %s573_s25  ;;  %33 = vrot.lane.b32.xlu0 %v607_v1, %s573_s25 }
  0x3e   :  { %39 = vrot.lane.b32.xlu1 %v613_v2, %s573_s25  ;;  %37 = vrot.lane.b32.xlu0 %v602_v0, %s573_s25 }
  0x42   :  { %368 = vperm.xlu0 %561, %v365_v6  }
  0x74   :  { %v238_v7 = vpop.permute.xlu1 %237  ;;  %v234_v8 = vpop.permute.xlu0 %233 }
  0x78   :  { %v240_v9 = vpop.permute.xlu1 %239  ;;  %v236_v10 = vpop.permute.xlu0 %235 }
  0x79   :  { %v242_v40 = vsel %vm241_vm2, %v238_v7, %v240_v9  ;;  %v245_v41 = vsel %vm241_vm2, %v240_v9, %v234_v8  ;;  %v243_v47 = vsel %vm241_vm2, %v236_v10, %v238_v7  ;;  %v244_v55 = vsel %vm241_vm2, %v234_v8, %v236_v10 }
  0x7a   :  { %v264_v53 = vmul.f32 %v257_v38, %v242_v40  ;;  %v265_v54 = vmul.f32 %v261_v39, %v245_v41  ;;  %v263_v57 = vmul.f32 %v253_v42, %v243_v47  ;;  %v220_v7 = vrot.slane %v686_v35, %v215_v49 }
  0x7b   :  { %v224_v8 = vrot.slane %v673_v31, %v215_v49  ;;  %v262_v9 = vmul.f32 %v249_v46, %v244_v55  ;;  %v149_v47 = vsub.s32 3, %v655_v15  ;;  %v116_v49 = vsub.s32 2, %v655_v15 }
  0x7c   :  { %v269_v13 = vpop.permute.xlu1 %268  ;;  %v267_v14 = vpop.permute.xlu0 %266 }
  0x7d   :  { %v277_v20 = vsel %vm274_vm0, %v267_v14, %v269_v13 }
  0x7e   :  { %v295_v30 = vmul.f32 %v541_v19, %v277_v20 }
  0x80   :  { %v273_v21 = vpop.permute.xlu1 %272  ;;  %v271_v22 = vpop.permute.xlu0 %270 }
  0x81   :  { %v278_v23 = vsel %vm274_vm0, %v273_v21, %v267_v14  ;;  %v275_v24 = vsel %vm274_vm0, %v271_v22, %v273_v21  ;;  %v276_v25 = vsel %vm274_vm0, %v269_v13, %v271_v22  ;;  %v341_v13 = vrot.slane %v264_v53, 4 }
  0x82   :  { %v297_v26 = vmul.f32 %v543_v16, %v275_v24  ;;  %v296_v27 = vmul.f32 %v542_v17, %v276_v25  ;;  %v298_v28 = vmul.f32 %v544_v18, %v278_v23  ;;  %v342_v14 = vrot.slane %v265_v54, 4 }
  0x83   :  { %v340_v16 = vrot.slane %v263_v57, 4  ;;  %v83_v53 = vsub.s32 1, %v655_v15 }
  0x84   :  { %v170_v33 = vpop.permute.xlu1 %169  ;;  %545 = vmatprep.subr.msk.mxu0 %vm347_vm1, %v296_v27  ;;  %548 = vmatprep.subr.msk.mxu1 %vm347_vm1, %v298_v28  ;;  %v168_v34 = vpop.permute.xlu0 %167  ;;  %v339_v28 = vrot.slane %v262_v9, 4 }
  0x85   :  { %546 = vmatpush1.msk.msra.mxu0 %vm347_vm1, %v295_v30  ;;  %549 = vmatpush1.msk.msra.mxu1 %vm347_vm1, %v297_v26  ;;  %v178_v58 = vsel %vm175_vm3, %v168_v34, %v170_v33  ;;  %v92_v9 = vrot.slane %v673_v31, %v83_v53 }
  0x86   :  { %v196_v10 = vmul.f32 %v183_v50, %v178_v58 }
  0x88   :  { %v174_v44 = vpop.permute.xlu1 %173  ;;  %v172_v45 = vpop.permute.xlu0 %171  ;;  %v327_v29 = vrot.slane %v196_v10, 4 }
  0x89   :  { %v179_v48 = vsel %vm175_vm3, %v174_v44, %v168_v34  ;;  %v177_v56 = vsel %vm175_vm3, %v170_v33, %v172_v45  ;;  %v176_v60 = vsel %vm175_vm3, %v172_v45, %v174_v44 }
  0x8a   :  { %v199_v59 = vmul.f32 %v195_v43, %v179_v48  ;;  %v197_v5 = vmul.f32 %v187_v51, %v177_v56  ;;  %v198_v11 = vmul.f32 %v191_v52, %v176_v60  ;;  %v356_v43 = vsel %vm347_vm1, %v607_v1, %v327_v29 }
  0x8b   :  { %v150_v1 = vrot.slane %v693_v36, %v149_v47  ;;  %v162_v52 = vrot.slane %v678_v32, %v149_v47 }
  0x8c   :  { %v203_v61 = vpop.permute.xlu1 %202  ;;  %v201_v62 = vpop.permute.xlu0 %200  ;;  %v330_v17 = vrot.slane %v199_v59, 4  ;;  %v328_v24 = vrot.slane %v197_v5, 4  ;;  %v329_v30 = vrot.slane %v198_v11, 4  ;;  %v121_v59 = vrot.slane %v686_v35, %v116_v49 }
  0x8d   :  { %v211_v6 = vsel %vm208_vm4, %v201_v62, %v203_v61  ;;  %v84_v5 = vrot.slane %v693_v36, %v83_v53  ;;  %v117_v11 = vrot.slane %v693_v36, %v116_v49 }
  0x8e   :  { %v229_v20 = vmul.f32 %v216_v63, %v211_v6  ;;  %v357_v41 = vsel %vm347_vm1, %v617_v3, %v328_v24  ;;  %v359_v42 = vsel %vm347_vm1, %v613_v2, %v330_v17  ;;  %v358_v44 = vsel %vm347_vm1, %v602_v0, %v329_v30 }
  0x8f   :  { %v154_v2 = vrot.slane %v686_v35, %v149_v47  ;;  %v158_v0 = vrot.slane %v673_v31, %v149_v47 }
  0x90   :  { %v207_v18 = vpop.permute.xlu1 %206  ;;  %v205_v19 = vpop.permute.xlu0 %204  ;;  %v360_v40 = vsel %vm347_vm1, %v229_v20, %v339_v28 }
  0x91   :  { %v212_v21 = vsel %vm208_vm4, %v207_v18, %v201_v62  ;;  %v209_v22 = vsel %vm208_vm4, %v205_v19, %v207_v18  ;;  %v210_v23 = vsel %vm208_vm4, %v203_v61, %v205_v19  ;;  %v759_v61 = vsub.s32 0, %v655_v15 }
  0x92   :  { %v232_v25 = vmul.f32 %v228_v4, %v212_v21  ;;  %v230_v26 = vmul.f32 %v220_v7, %v210_v23  ;;  %v231_v27 = vmul.f32 %v224_v8, %v209_v22  ;;  %v88_v4 = vrot.slane %v686_v35, %v83_v53 }
  0x93   :  { %v96_v18 = vrot.slane %v678_v32, %v83_v53  ;;  %v55_v19 = vrot.slane %v686_v35, %v759_v61  ;;  %v59_v47 = vrot.slane %v673_v31, %v759_v61 }
  0x94   :  { %v137_v33 = vpop.permute.xlu1 %136  ;;  %v135_v34 = vpop.permute.xlu0 %134  ;;  %v361_v37 = vsel %vm347_vm1, %v230_v26, %v340_v16  ;;  %v363_v38 = vsel %vm347_vm1, %v232_v25, %v342_v14  ;;  %v362_v39 = vsel %vm347_vm1, %v231_v27, %v341_v13  ;;  %v125_v14 = vrot.slane %v673_v31, %v116_v49 }
  0x95   :  { %411 = vmatprep.subr.mxu0 %v361_v37  ;;  %482 = vmatprep.subr.mxu1 %v363_v38  ;;  %v145_v50 = vsel %vm142_vm5, %v135_v34, %v137_v33  ;;  %v129_v16 = vrot.slane %v678_v32, %v116_v49  ;;  %v51_v38 = vrot.slane %v693_v36, %v759_v61 }
  0x96   :  { %412 = vmatpush1.msra.mxu0 %v360_v40  ;;  %483 = vmatpush1.msra.mxu1 %v362_v39  ;;  %v164_v58 = vmul.f32 %v154_v2, %v145_v50  ;;  %v63_v2 = vrot.slane %v678_v32, %v759_v61 }
  0x97   :  { %413 = vmatprep.subr.mxu0 %v357_v41  ;;  %484 = vmatprep.subr.mxu1 %v359_v42 }
  0x98   :  { %v141_v45 = vpop.permute.xlu1 %140  ;;  %414 = vmatpush1.msra.mxu0 %v356_v43  ;;  %485 = vmatpush1.msra.mxu1 %v358_v44  ;;  %v139_v46 = vpop.permute.xlu0 %138  ;;  %v316_v15 = vrot.slane %v164_v58, 4 }
  0x99   :  { %v146_v51 = vsel %vm142_vm5, %v141_v45, %v135_v34  ;;  %v143_v56 = vsel %vm142_vm5, %v139_v46, %v141_v45  ;;  %v144_v57 = vsel %vm142_vm5, %v137_v33, %v139_v46 }
  0x9a   :  { %v163_v60 = vmul.f32 %v150_v1, %v146_v51  ;;  %v165_v62 = vmul.f32 %v158_v0, %v144_v57  ;;  %v166_v63 = vmul.f32 %v162_v52, %v143_v56  ;;  %v364_v57 = vld [vmem:[%s827_s1] sm:$0xff] }
  0x9c   :  { %v71_v3 = vpop.permute.xlu1 %70  ;;  %v69_v48 = vpop.permute.xlu0 %68  ;;  %v315_v17 = vrot.slane %v163_v60, 4  ;;  %v317_v20 = vrot.slane %v165_v62, 4  ;;  %v318_v21 = vrot.slane %v166_v63, 4 }
  0x9d   :  { %v79_v8 = vsel %vm76_vm6, %v69_v48, %v71_v3 }
  0x9e   :  { %v98_v22 = vmul.f32 %v88_v4, %v79_v8 }
  0xa0   :  { %v75_v54 = vpop.permute.xlu1 %74  ;;  %v73_v55 = vpop.permute.xlu0 %72 }
  0xa1   :  { %v80_v26 = vsel %vm76_vm6, %v75_v54, %v69_v48  ;;  %v78_v35 = vsel %vm76_vm6, %v71_v3, %v73_v55  ;;  %v77_v37 = vsel %vm76_vm6, %v73_v55, %v75_v54  ;;  %v304_v3 = vrot.slane %v98_v22, 4 }
  0xa2   :  { %v97_v39 = vmul.f32 %v84_v5, %v80_v26  ;;  %v99_v45 = vmul.f32 %v92_v9, %v78_v35  ;;  %v100_v36 = vmul.f32 %v96_v18, %v77_v37 }
  0xa4   :  { %v104_v6 = vpop.permute.xlu1 %103  ;;  %v102_v7 = vpop.permute.xlu0 %101  ;;  %v303_v49 = vrot.slane %v97_v39, 4  ;;  %v305_v0 = vrot.slane %v99_v45, 4  ;;  %v306_v54 = vrot.slane %v100_v36, 4 }
  0xa5   :  { %v112_v10 = vsel %vm109_vm7, %v102_v7, %v104_v6 }
  0xa6   :  { %v131_v13 = vmul.f32 %v121_v59, %v112_v10 }
  0xa8   :  { %v108_v23 = vpop.permute.xlu1 %107  ;;  %v106_v24 = vpop.permute.xlu0 %105  ;;  %v353_v25 = vsel %vm347_vm1, %v131_v13, %v316_v15 }
  0xa9   :  { %v113_v27 = vsel %vm109_vm7, %v108_v23, %v102_v7  ;;  %v110_v28 = vsel %vm109_vm7, %v106_v24, %v108_v23  ;;  %v111_v29 = vsel %vm109_vm7, %v104_v6, %v106_v24  ;;  %415 = vmatprep.subr.mxu0 %v353_v25 }
  0xaa   :  { %v130_v30 = vmul.f32 %v117_v11, %v113_v27  ;;  %v132_v33 = vmul.f32 %v125_v14, %v111_v29  ;;  %v133_v34 = vmul.f32 %v129_v16, %v110_v28 }
  0xac   :  { %v36_v40 = vpop.permute.xlu1 %35  ;;  %v34_v41 = vpop.permute.xlu0 %33  ;;  %v352_v42 = vsel %vm347_vm1, %v130_v30, %v315_v17  ;;  %v355_v43 = vsel %vm347_vm1, %v133_v34, %v318_v21  ;;  %v354_v44 = vsel %vm347_vm1, %v132_v33, %v317_v20 }
  0xad   :  { %v46_v46 = vsel %vm43_vm8, %v34_v41, %v36_v40  ;;  %416 = vmatpush1.msra.mxu0 %v352_v42  ;;  %486 = vmatprep.subr.mxu1 %v355_v43 }
  0xae   :  { %v65_v48 = vmul.f32 %v55_v19, %v46_v46  ;;  %487 = vmatpush1.msra.mxu1 %v354_v44 }
  0xb0   :  { %v40_v50 = vpop.permute.xlu1 %39  ;;  %v38_v1 = vpop.permute.xlu0 %37  ;;  %v349_v51 = vsel %vm347_vm1, %v65_v48, %v304_v3 }
  0xb1   :  { %v47_v52 = vsel %vm43_vm8, %v40_v50, %v34_v41  ;;  %v44_v53 = vsel %vm43_vm8, %v38_v1, %v40_v50  ;;  %v45_v31 = vsel %vm43_vm8, %v36_v40, %v38_v1  ;;  %417 = vmatprep.subr.mxu0 %v349_v51 }
  0xb2   :  { %v64_v55 = vmul.f32 %v51_v38, %v47_v52  ;;  %v66_v56 = vmul.f32 %v59_v47, %v45_v31  ;;  %v67_v32 = vmul.f32 %v63_v2, %v44_v53 }
  0xb4   :  { %v348_v58 = vsel %vm347_vm1, %v64_v55, %v303_v49  ;;  %v351_v59 = vsel %vm347_vm1, %v67_v32, %v306_v54  ;;  %v350_v60 = vsel %vm347_vm1, %v66_v56, %v305_v0 }
  0xb5   :  { %418 = vmatpush1.msra.mxu0 %v348_v58  ;;  %488 = vmatprep.subr.mxu1 %v351_v59 }
  0xb6   :  { %547 = vmatmul.mubr.msk.f32.vlgmr.msra.gmra.mxu0 %vm371_vm9, %v364_v57  ;;  %489 = vmatpush1.msra.mxu1 %v350_v60 }
  0xb7   :  { %550 = vmatmul.mubr.msk.f32.vlgmr.msra.gmra.mxu1 %vm371_vm9, %v364_v57 }
  0xbd   :  { %v369_v12 = vpop.permute.xlu0 %368 }
 0x176   :  { %v453_v61 = vpop.f32.mrf.mxu0 }
 0x177   :  { %v524_v62 = vpop.f32.mrf.mxu1  ;;  %v454_v63 = vadd.f32 %v453_v61, %v369_v12 }
 0x178   :  { %v525_v4 = vadd.f32 %v524_v62, %v369_v12  ;;  %v455_v5 = vpop.f32.mrf.mxu0 }
 0x179   :  { %v529_v6 = vmax.f32 %v454_v63, 0.0  ;;  %v456_v7 = vadd.f32 %v455_v5, %v369_v12  ;;  %v526_v8 = vpop.f32.mrf.mxu1 }
 0x17a   :  { %v531_v9 = vmax.f32 %v525_v4, 0.0  ;;  %v527_v10 = vadd.f32 %v526_v8, %v369_v12 }
 0x17b   :  { %533 = vst [vmem:[%s828_s4] sm:$0xff] %v529_v6  ;;  %v530_v11 = vmax.f32 %v456_v7, 0.0 }
 0x17c   :  { %535 = vst [vmem:[%s828_s4 + $0x10] sm:$0xff] %v531_v9  ;;  %v532_v15 = vmax.f32 %v527_v10, 0.0 }
 0x17d   :  { %534 = vst [vmem:[%s828_s4 + $0x8] sm:$0xff] %v530_v11 }
 0x17e   :  { %536 = vst [vmem:[%s828_s4 + $0x18] sm:$0xff] %v532_v15 }

</bundles_post_ra>
